<compile_context>
chip_gen: v7x
topology: tpu7x:2x2x1
jax: 0.10.0
libtpu: 0.0.40
codegen_flags: <defaults>
</compile_context>

<pallas_src>
import math

import jax
import jax.numpy as jnp
import numpy as np
from jax import lax
from jax.experimental import pallas as pl
from jax.experimental.pallas import tpu as pltpu


# ----------------------------------------------------------------------------
# tiling helpers (tiles either divide the dim or are the full dim -> (8,128) safe)
# ----------------------------------------------------------------------------

def _tile_rows(n, pref=256):          # second-to-last block dims (need %8 or full)
    if n <= pref:
        return n
    for t in (pref, 256, 128, 8):
        if n % t == 0:
            return t
    return n


def _tile_lanes(n, pref=256):         # last block dims (need %128 or full)
    if n <= pref:
        return n
    for t in (pref, 256, 128):
        if n % t == 0:
            return t
    return n


_VMEM_LIMIT = 48 * 1024 * 1024        # explicit scoped-VMEM budget (safe on v5e/v6e/v7x)


# ----------------------------------------------------------------------------
# 1) tiled linear:  (M,K) @ (K,N) + b   (bf16 MXU operands, f32 accumulate)
# ----------------------------------------------------------------------------

def linear_tiled(x, w, b, *, mxu_dtype=jnp.bfloat16):
    M, K = x.shape
    N = w.shape[1]
    TM = _tile_rows(M, 256)
    TN = _tile_lanes(N, 256)

    def kernel(x_ref, w_ref, b_ref, o_ref):
        acc = jnp.dot(x_ref[...].astype(mxu_dtype), w_ref[...].astype(mxu_dtype),
                      preferred_element_type=jnp.float32)
        o_ref[...] = (acc + b_ref[...]).astype(o_ref.dtype)

    return pl.pallas_call(
        kernel,
        out_shape=jax.ShapeDtypeStruct((M, N), jnp.float32),
        grid=(M // TM, N // TN),
        in_specs=[pl.BlockSpec((TM, K), lambda i, j: (i, 0)),
                  pl.BlockSpec((K, TN), lambda i, j: (0, j)),
                  pl.BlockSpec((1, TN), lambda i, j: (0, j))],
        out_specs=pl.BlockSpec((TM, TN), lambda i, j: (i, j)),
        compiler_params=pltpu.CompilerParams(
            dimension_semantics=("parallel", "parallel"),
            vmem_limit_bytes=_VMEM_LIMIT),
    )(x, w, b)


# ----------------------------------------------------------------------------
# 2) depthwise short conv (k=3, left pad 2) + fused (b,l,C)->(C,b,l) relayout
#    layout: input NLC (length on sublanes -> sublane shifts, channels lane-dense)
# ----------------------------------------------------------------------------

def short_conv_channelmajor(up, w3c, b1c):
    # up: (B, L, C);  w3c: (3, C) [tap, channel];  b1c: (1, C)  ->  out: (C, B, L)
    B, L, C = up.shape
    C_blk = _tile_lanes(C, 128)
    n_ct = C // C_blk

    # TODO(synk): for very long sequences, tile L with a 2-sample halo instead of full-L blocks.
    def kernel(u_ref, w_ref, b_ref, o_ref):
        wv = w_ref[...]                                  # (3, C_blk)
        bv = b_ref[...]                                  # (1, C_blk)
        z = jnp.zeros((1, C_blk), u_ref.dtype)
        for bi in range(B):
            u = u_ref[bi]                                # (L, C_blk)
            u1 = jnp.concatenate([z, u[:L - 1, :]], axis=0)          # u[m-1]
            u2 = jnp.concatenate([z, z, u[:L - 2, :]], axis=0)       # u[m-2]
            conv = wv[0:1, :] * u2 + wv[1:2, :] * u1 + wv[2:3, :] * u + bv
            o_ref[:, bi, :] = conv.T                     # fused relayout to channel-major

    return pl.pallas_call(
        kernel,
        out_shape=jax.ShapeDtypeStruct((C, B, L), jnp.float32),
        grid=(n_ct,),
        in_specs=[pl.BlockSpec((B, L, C_blk), lambda ct: (0, 0, ct)),
                  pl.BlockSpec((3, C_blk), lambda ct: (0, ct)),
                  pl.BlockSpec((1, C_blk), lambda ct: (0, ct))],
        out_specs=pl.BlockSpec((C_blk, B, L), lambda ct: (ct, 0, 0)),
        compiler_params=pltpu.CompilerParams(dimension_semantics=("parallel",)),
    )(up, w3c, b1c)


# ----------------------------------------------------------------------------
# 3) implicit Hyena filter: MLP(z) with Sin activations * exponential modulation
#    (tiny + numerically sensitive -> kept f32; row-tiled for a parallel grid)
# ----------------------------------------------------------------------------

def hyena_filter_pallas(zL, tL, p, L, d_filt, filter_order, emb_dim):
    fo = filter_order
    TL = _tile_rows(L, 256)

    def kernel(z_ref, t_ref, freq_ref, w0, b0, w1, b1, w2, b2, w3, deltas_ref, k_ref):
        freq = freq_ref[...]
        h = jnp.sin(freq * (jnp.dot(z_ref[...], w0[...], preferred_element_type=jnp.float32) + b0[...]))
        h = jnp.sin(freq * (jnp.dot(h, w1[...], preferred_element_type=jnp.float32) + b1[...]))
        h = jnp.sin(freq * (jnp.dot(h, w2[...], preferred_element_type=jnp.float32) + b2[...]))
        h = jnp.dot(h, w3[...], preferred_element_type=jnp.float32)
        # ExponentialModulation (modulate=True, shift=0.0)
        k_ref[...] = h * jnp.exp(-t_ref[...] * jnp.abs(deltas_ref[...]))

    return pl.pallas_call(
        kernel,
        out_shape=jax.ShapeDtypeStruct((L, d_filt), jnp.float32),
        grid=(L // TL,),
        in_specs=[pl.BlockSpec((TL, emb_dim), lambda i: (i, 0)),
                  pl.BlockSpec((TL, 1), lambda i: (i, 0)),
                  pl.BlockSpec((1, fo), lambda i: (0, 0)),
                  pl.BlockSpec((emb_dim, fo), lambda i: (0, 0)),
                  pl.BlockSpec((1, fo), lambda i: (0, 0)),
                  pl.BlockSpec((fo, fo), lambda i: (0, 0)),
                  pl.BlockSpec((1, fo), lambda i: (0, 0)),
                  pl.BlockSpec((fo, fo), lambda i: (0, 0)),
                  pl.BlockSpec((1, fo), lambda i: (0, 0)),
                  pl.BlockSpec((fo, d_filt), lambda i: (0, 0)),
                  pl.BlockSpec((1, d_filt), lambda i: (0, 0))],
        out_specs=pl.BlockSpec((TL, d_filt), lambda i: (i, 0)),
        compiler_params=pltpu.CompilerParams(dimension_semantics=("parallel",)),
    )(zL, tL, p['f_freq'], p['f_w0'], p['f_b0'], p['f_w1'], p['f_b1'],
      p['f_w2'], p['f_b2'], p['f_w3'], p['deltas'])


# ----------------------------------------------------------------------------
# 4) gated causal long conv on the MXU
#    y[c,b,m] = sum_{s>=m} (v*x)[c,b,s] * k[c, L-1+m-s]  +  (v*x)[c,b,m] * D[c]
#    (identical to fftconv(v*x, k, D) sliced at [L-1:2L-1])
# ----------------------------------------------------------------------------

def gated_long_conv(v_arr, v_chunk, x_arr, x_chunk, k, D, *, d_model, mxu_dtype=jnp.bfloat16):
    # v_arr: (Cv, B, L) channel-major; x_arr: (Cx, B, L); k: (d, L); D: (d,)
    _, B, L = v_arr.shape
    d = d_model
    T = _tile_lanes(L, 128)           # L tile (both output-m and reduction-s tiles)
    n_so = L // T
    d_blk = _tile_rows(d, 128)
    n_ct = d // d_blk
    Lp = L + T

    kp = jnp.pad(k, ((0, 0), (0, T)))          # zero right-pad => causality handled by padding
    Dr = D.reshape(d, 1, 1)
    v_base = v_chunk * n_ct
    x_base = x_chunk * n_ct

    # The (T, T) Toeplitz tile tt[c,s,m] = kp[c, L-1-soi*T + m - s] depends only on the tile diff
    # soi = so - mo, never on mo.  When the full set of n_so tiles fits comfortably in VMEM it is
    # built ONCE per channel block (all-static addressing) and reused across the whole mo sweep;
    # otherwise fall back to rebuilding the single needed tile every step (previous behaviour).
    cache_bytes = n_so * d_blk * T * T * 4
    use_cache = (cache_bytes <= 12 * 1024 * 1024) and (n_so * T <= 4096)
    n_tt = n_so if use_cache else 1

    def kernel(v_ref, x_ref, kp_ref, d_ref, o_ref, acc_ref, tt_ref):
        mo = pl.program_id(1)
        soi = pl.program_id(2)

        @pl.when(mo + soi < n_so)                        # causal: only upper-triangular tiles
        def _active():
            vg = v_ref[...] * x_ref[...]                 # fused gate (dropout p=0 -> identity)

            @pl.when(soi == 0)
            def _init():
                # diagonal step also carries the fftconv bias term (v*x) * D
                acc_ref[...] = vg * d_ref[...]

            if use_cache:
                @pl.when((mo == 0) & (soi == 0))
                def _build_all():
                    # Build every diff-tile from the VMEM-resident padded filter with fully
                    # static sublane rows and lane windows.
                    for si in range(n_so):
                        base = (L - 1) - si * T
                        for s in range(T):
                            tt_ref[si, :, s, :] = kp_ref[:, base - s:base - s + T]
                tt = tt_ref[soi]
            else:
                base = (L - 1) - soi * T
                for s in range(T):
                    tt_ref[0, :, s, :] = kp_ref[:, pl.ds(base - s, T)]
                tt = tt_ref[0]

            acc_ref[...] += jnp.einsum(
                'cbs,csm->cbm',
                vg.astype(mxu_dtype), tt.astype(mxu_dtype),
                preferred_element_type=jnp.float32)

        @pl.when(soi == n_so - 1)
        def _store():
            o_ref[...] = acc_ref[...].astype(o_ref.dtype)

    return pl.pallas_call(
        kernel,
        out_shape=jax.ShapeDtypeStruct((d, B, L), jnp.float32),
        grid=(n_ct, n_so, n_so),
        in_specs=[
            pl.BlockSpec((d_blk, B, T),
                         lambda ct, mo, soi: (v_base + ct, 0, jnp.minimum(mo + soi, n_so - 1))),
            pl.BlockSpec((d_blk, B, T),
                         lambda ct, mo, soi: (x_base + ct, 0, jnp.minimum(mo + soi, n_so - 1))),
            pl.BlockSpec((d_blk, Lp), lambda ct, mo, soi: (ct, 0)),      # k stays VMEM-resident
            pl.BlockSpec((d_blk, 1, 1), lambda ct, mo, soi: (ct, 0, 0)),
        ],
        out_specs=pl.BlockSpec((d_blk, B, T), lambda ct, mo, soi: (ct, 0, mo)),
        scratch_shapes=[pltpu.VMEM((d_blk, B, T), jnp.float32),          # accumulator
                        pltpu.VMEM((n_tt, d_blk, T, T), jnp.float32)],   # Toeplitz tile cache
        compiler_params=pltpu.CompilerParams(
            dimension_semantics=("parallel", "arbitrary", "arbitrary"),
            vmem_limit_bytes=_VMEM_LIMIT),
    )(v_arr, x_arr, kp, Dr)


# ----------------------------------------------------------------------------
# 5) out_proj fused with the final (v * x0) gate; output back in (b, l, d)
# ----------------------------------------------------------------------------

def out_proj_gated(v_arr, v_chunk, x_arr, x_chunk, w, b, *, mxu_dtype=jnp.bfloat16):
    _, B, L = v_arr.shape
    d, N = w.shape
    Lt = _tile_lanes(L, 256)
    n_lt = L // Lt

    def kernel(v_ref, x_ref, w_ref, b_ref, o_ref):
        wv = w_ref[...].astype(mxu_dtype)                # (d, N), VMEM-resident across the grid
        bv = b_ref[...]                                  # (1, N)
        for bi in range(B):
            g = v_ref[:, bi, :] * x_ref[:, bi, :]        # (d, Lt) final gate in f32 on the VPU
            acc = jnp.dot(g.T.astype(mxu_dtype), wv, preferred_element_type=jnp.float32)
            o_ref[bi] = (acc + bv).astype(o_ref.dtype)

    return pl.pallas_call(
        kernel,
        out_shape=jax.ShapeDtypeStruct((B, L, N), jnp.float32),
        grid=(n_lt,),
        in_specs=[pl.BlockSpec((d, B, Lt), lambda lt: (v_chunk, 0, lt)),
                  pl.BlockSpec((d, B, Lt), lambda lt: (x_chunk, 0, lt)),
                  pl.BlockSpec((d, N), lambda lt: (0, 0)),
                  pl.BlockSpec((1, N), lambda lt: (0, 0))],
        out_specs=pl.BlockSpec((B, Lt, N), lambda lt: (0, lt, 0)),
        compiler_params=pltpu.CompilerParams(
            dimension_semantics=("parallel",),
            vmem_limit_bytes=_VMEM_LIMIT),
    )(v_arr, x_arr, w, b)


# ----------------------------------------------------------------------------
# HyenaOperator forward (Pallas kernels + thin JAX glue on small tensors only)
# ----------------------------------------------------------------------------

def hyena_operator_forward(u, p, *, d_model, l_max, order, filter_order, emb_dim=3,
                           mxu_dtype=jnp.bfloat16):
    b, l, _ = u.shape
    l_filter = min(l, l_max)
    inner = d_model * (order + 1)
    d_filt = d_model * (order - 1)

    # in_proj (tiled MXU matmul)
    up = linear_tiled(u.reshape(b * l, d_model), p['in_proj_w'], p['in_proj_b'],
                      mxu_dtype=mxu_dtype)
    up3 = up.reshape(b, l, inner)                                   # NLC, free reshape

    # depthwise short filter + fused channel-major relayout: uc_t (inner, b, l)
    uc_t = short_conv_channelmajor(up3, p['short_w'].T, p['short_b'].reshape(1, inner))
    uc_t = uc_t[..., :l_filter]
    L = l_filter

    # implicit filter k and per-channel bias D (small tensors)
    zL = p['pos_z'][0, :L]                                          # (L, emb_dim)
    tL = p['pos_t'][0, :L]                                          # (L, 1)
    kflat = hyena_filter_pallas(zL, tL, p, L, d_filt, filter_order, emb_dim)
    k_r = kflat.reshape(L, order - 1, d_model).transpose(1, 2, 0)   # 'l (o d) -> o d l'
    bias_r = p['f_bias'].reshape(order - 1, d_model)                # '(o d) -> o d'

    # Hyena recurrence: v = fftconv(v * x_i, k_o, D_o) as a causal MXU Toeplitz contraction
    v_arr, v_chunk = uc_t, order
    x_chunk_ids = list(range(order))
    for o, x_ci in enumerate(reversed(x_chunk_ids[1:])):
        v_arr = gated_long_conv(v_arr, v_chunk, uc_t, x_ci, k_r[o], bias_r[o],
                                d_model=d_model, mxu_dtype=mxu_dtype)
        v_chunk = 0

    # out_proj fused with the final (v * x0) gate; result is (b, l_filter, d_model)
    return out_proj_gated(v_arr, v_chunk, uc_t, 0, p['out_proj_w'], p['out_proj_b'],
                          mxu_dtype=mxu_dtype)


# ----------------------------------------------------------------------------
# Pure-JAX reference (mirrors the PyTorch module, FFT-based long conv)
# ----------------------------------------------------------------------------

def _fftconv_ref(u, k, D):
    L = u.shape[-1]
    fft_size = 2 * L
    k_f = jnp.fft.rfft(k, n=fft_size) / fft_size
    u_f = jnp.fft.rfft(u, n=fft_size)
    y = jnp.fft.irfft(u_f * k_f, n=fft_size, norm='forward')[..., L - 1:2 * L - 1]
    return y + u * D[..., None]


def hyena_operator_reference(u, p, *, d_model, l_max, order):
    b, l, _ = u.shape
    l_filter = min(l, l_max)
    inner = d_model * (order + 1)
    up = u.reshape(b * l, d_model) @ p['in_proj_w'] + p['in_proj_b']
    uproj = up.reshape(b, l, inner).transpose(0, 2, 1)
    conv = lax.conv_general_dilated(
        uproj, p['short_w'][:, None, :], window_strides=(1,), padding=((2, 2),),
        dimension_numbers=('NCH', 'OIH', 'NCH'), feature_group_count=inner)
    uc = (conv + p['short_b'][None, :, None])[..., :l_filter]
    chunks = [uc[:, i * d_model:(i + 1) * d_model, :] for i in range(order + 1)]
    xs, v = chunks[:-1], chunks[-1]
    zL = p['pos_z'][0, :l_filter]
    tL = p['pos_t'][0, :l_filter]
    freq = p['f_freq']
    h = jnp.sin(freq * (zL @ p['f_w0'] + p['f_b0']))
    h = jnp.sin(freq * (h @ p['f_w1'] + p['f_b1']))
    h = jnp.sin(freq * (h @ p['f_w2'] + p['f_b2']))
    h = h @ p['f_w3']
    kflat = h * jnp.exp(-tL * jnp.abs(p['deltas']))
    k_r = kflat.reshape(l_filter, order - 1, d_model).transpose(1, 2, 0)
    bias_r = p['f_bias'].reshape(order - 1, d_model)
    for o, x_i in enumerate(reversed(xs[1:])):
        v = _fftconv_ref(v * x_i, k_r[o], bias_r[o])
    y = (v * xs[0]).transpose(0, 2, 1).reshape(b * l_filter, d_model)
    out = y @ p['out_proj_w'] + p['out_proj_b']
    return out.reshape(b, l_filter, d_model)


# ----------------------------------------------------------------------------
# Deterministic parameter initialization (shapes as in HyenaOperator.__init__)
# ----------------------------------------------------------------------------

def init_params(key, d_model, l_max, order, filter_order, emb_dim=3,
                fast_decay_pct=0.3, slow_decay_pct=1.5, target=0.01, w_act=1.0):
    inner = d_model * (order + 1)
    d_filt = d_model * (order - 1)
    ks = jax.random.split(key, 16)

    def rnd(k, shape, scale=0.1):
        return scale * jax.random.normal(k, shape, jnp.float32)

    p = {
        'in_proj_w': rnd(ks[0], (d_model, inner)),       # stored (in, out)
        'in_proj_b': rnd(ks[1], (1, inner)),
        'out_proj_w': rnd(ks[2], (d_model, d_model)),
        'out_proj_b': rnd(ks[3], (1, d_model)),
        'short_w': rnd(ks[4], (inner, 3), 0.5),          # depthwise Conv1d weight (C,1,3) squeezed
        'short_b': rnd(ks[5], (inner,), 0.1),
        'f_w0': rnd(ks[6], (emb_dim, filter_order), 0.5),
        'f_b0': rnd(ks[7], (1, filter_order)),
        'f_w1': rnd(ks[8], (filter_order, filter_order), 0.3),
        'f_b1': rnd(ks[9], (1, filter_order)),
        'f_w2': rnd(ks[10], (filter_order, filter_order), 0.3),
        'f_b2': rnd(ks[11], (1, filter_order)),
        'f_w3': rnd(ks[12], (filter_order, d_filt), 0.3),   # final Linear, bias=False
        'f_freq': w_act * jnp.ones((1, filter_order), jnp.float32),   # Sin freq (w * ones)
        'f_bias': rnd(ks[13], (d_filt,), 1.0),               # HyenaFilter.bias ~ randn(d_filt)
    }

    # PositionalEmbedding buffers (exact formulas)
    seq_len = l_max
    t = jnp.linspace(0.0, 1.0, seq_len)[None, :, None]
    bands = (emb_dim - 1) // 2
    t_rescaled = jnp.linspace(0.0, seq_len - 1, seq_len)[None, :, None]
    w_ang = 2 * math.pi * t_rescaled / seq_len
    f = jnp.linspace(1e-4, bands - 1, bands)[None, None]
    zc = jnp.exp(-1j * f * w_ang)
    p['pos_z'] = jnp.concatenate([t, zc.real, zc.imag], axis=-1).astype(jnp.float32)
    p['pos_t'] = t.astype(jnp.float32)

    # ExponentialModulation deltas
    max_decay = math.log(target) / fast_decay_pct
    min_decay = math.log(target) / slow_decay_pct
    p['deltas'] = jnp.linspace(min_decay, max_decay, d_filt)[None, :].astype(jnp.float32)
    return p


# ----------------------------------------------------------------------------

def _run_case(key, *, d_model, l_max, order, filter_order, B, L, f32_tol, bf16_tol):
    params = init_params(key, d_model, l_max, order, filter_order)
    u = jax.random.normal(jax.random.fold_in(key, 999), (B, L, d_model), jnp.float32)

    ref = hyena_operator_reference(u, params, d_model=d_model, l_max=l_max, order=order)

    # f32 MXU operands: tight check against the FFT-based reference.
    out_f32 = jax.block_until_ready(hyena_operator_forward(
        u, params, d_model=d_model, l_max=l_max, order=order,
        filter_order=filter_order, mxu_dtype=jnp.float32))
    np.testing.assert_allclose(np.asarray(out_f32), np.asarray(ref), rtol=f32_tol, atol=f32_tol)

    # bf16 MXU operands (default fast path): f32 accumulation, looser tolerance.
    out_bf16 = jax.block_until_ready(hyena_operator_forward(
        u, params, d_model=d_model, l_max=l_max, order=order,
        filter_order=filter_order, mxu_dtype=jnp.bfloat16))
    np.testing.assert_allclose(np.asarray(out_bf16), np.asarray(ref),
                               rtol=bf16_tol, atol=bf16_tol)


if __name__ == "__main__":
    key = jax.random.PRNGKey(0)

    # Small shape (single L tile everywhere): strict numerics check.
    _run_case(key, d_model=8, l_max=16, order=2, filter_order=16, B=2, L=16,
              f32_tol=2e-3, bf16_tol=3e-2)

    # Multi-tile shape: exercises the causal tile remap, clamped index maps, the VMEM-cached
    # Toeplitz-tile path and all grid tilings (in_proj / filter / long conv / out_proj).
    _run_case(jax.random.fold_in(key, 1), d_model=16, l_max=384, order=2, filter_order=16,
              B=2, L=384, f32_tol=5e-3, bf16_tol=1e-1)

    print("KERNEL_OK")
</pallas_src>

<mosaic_0001>
module attributes {stable_mosaic.version = 11 : i64} {
  func.func @kernel(%arg0: i32, %arg1: i32, %arg2: memref<32x8xf32, #tpu.memory_space<vmem>>, %arg3: memref<8x24xf32, #tpu.memory_space<vmem>>, %arg4: memref<1x24xf32, #tpu.memory_space<vmem>>, %arg5: memref<32x24xf32, #tpu.memory_space<vmem>>) attributes {dimension_semantics = [#tpu.dimension_semantics<parallel>, #tpu.dimension_semantics<parallel>], iteration_bounds = array<i64: 1, 1>, scalar_prefetch = 0 : i64, scratch_operands = 0 : i64, tpu.core_type = #tpu.core_type<tc>, window_params = [{transform_indices = @transform_0, window_bounds = array<i64: 32, 8>}, {transform_indices = @transform_1, window_bounds = array<i64: 8, 24>}, {transform_indices = @transform_2, window_bounds = array<i64: 1, 24>}, {transform_indices = @transform_3, window_bounds = array<i64: 32, 24>}]} {
    %c0 = arith.constant 0 : index
    %c0_0 = arith.constant 0 : index
    %0 = vector.load %arg2[%c0, %c0_0] : memref<32x8xf32, #tpu.memory_space<vmem>>, vector<32x8xf32>
    %c0_1 = arith.constant 0 : index
    %c0_2 = arith.constant 0 : index
    %1 = vector.load %arg3[%c0_1, %c0_2] : memref<8x24xf32, #tpu.memory_space<vmem>>, vector<8x24xf32>
    %cst = arith.constant dense<0.000000e+00> : vector<32x24xf32>
    %2 = tpu.matmul %0, %1, %cst {dimension_numbers = #tpu.dot_dimension_numbers<[1], [0], [0], [1], [0, 0, 1, 1], [], []>} : vector<32x8xf32>, vector<8x24xf32>, vector<32x24xf32> -> vector<32x24xf32>
    %c0_3 = arith.constant 0 : index
    %c0_4 = arith.constant 0 : index
    %3 = vector.load %arg4[%c0_3, %c0_4] : memref<1x24xf32, #tpu.memory_space<vmem>>, vector<1x24xf32>
    %4 = vector.broadcast %3 : vector<1x24xf32> to vector<32x24xf32>
    %5 = arith.addf %2, %4 : vector<32x24xf32>
    %c0_5 = arith.constant 0 : index
    %c0_6 = arith.constant 0 : index
    %6 = vector.load %arg5[%c0_5, %c0_6] : memref<32x24xf32, #tpu.memory_space<vmem>>, vector<32x24xf32>
    tpu.vector_store %arg5[%c0_5, %c0_6], %5 {strides = array<i32>} : memref<32x24xf32, #tpu.memory_space<vmem>>, vector<32x24xf32>,
    return
  }
  func.func @transform_0(%arg0: i32, %arg1: i32) -> (i32, i32) {
    %c0_i32 = arith.constant 0 : i32
    %c0_i32_0 = arith.constant 0 : i32
    return %arg0, %c0_i32 : i32, i32
  }
  func.func @transform_1(%arg0: i32, %arg1: i32) -> (i32, i32) {
    %c0_i32 = arith.constant 0 : i32
    %c0_i32_0 = arith.constant 0 : i32
    return %c0_i32, %arg1 : i32, i32
  }
  func.func @transform_2(%arg0: i32, %arg1: i32) -> (i32, i32) {
    %c0_i32 = arith.constant 0 : i32
    %c0_i32_0 = arith.constant 0 : i32
    return %c0_i32, %arg1 : i32, i32
  }
  func.func @transform_3(%arg0: i32, %arg1: i32) -> (i32, i32) {
    %c0_i32 = arith.constant 0 : i32
    return %arg0, %arg1 : i32, i32
  }
}

</mosaic_0001>

<bundles_post_ra>
// kernel: tpu_custom_call.1
= control target key start
LH: loop header
LB: loop body
LE: loop exit
PB: predicated region body
PF: predicated region fallthrough
CT: control target
= control target key end

     0   :  { %vm26_vm0 = vcmask 64512   ;;  %vm124_vm1 = vcmask 195584   ;;  %s203_s1 = inlined_call_operand.vmem [shape: f32[8,24], index: 1, kind: input, shape index: {}]   ;;  %s204_s0 = inlined_call_operand.vmem [shape: f32[32,8], index: 0, kind: input, shape index: {}]   ;;  %s205_s2 = inlined_call_operand.vmem [shape: f32[1,24], index: 2, kind: input, shape index: {}]   ;;  %s206_s3 = inlined_call_operand.vmem [shape: f32[32,24], index: 3, kind: output, shape index: {}]  }
   0x1   :  { %v18_v0 = vld [vmem:[%s203_s1] sm:$0xff]  ;;  %v16_v2 = vld [vmem:[%s204_s0 + $0x10] sm:$0xff]  ;;  %v15_v3 = vld [vmem:[%s204_s0 + $0x8] sm:$0xff] }
   0x2   :  { %v14_v1 = vld [vmem:[%s204_s0] sm:$0xff]  ;;  %143 = vmatprep.subr.mxu0 %v18_v0  ;;  %151 = vmatprep.subr.mxu1 %v18_v0  ;;  %v17_v4 = vld [vmem:[%s204_s0 + $0x18] sm:$0xff] }
   0x3   :  { %144 = vmatpush3.msra.mxu0 %v18_v0  ;;  %152 = vmatpush3.msra.mxu1 %v18_v0  ;;  %v133_v5 = vld [vmem:[%s205_s2] ss:$0 sm:$0xff] }
   0x4   :  { %145 = vmatprep.mubr.msk.f32.mxu0 %vm26_vm0, %v14_v1  ;;  %148 = vmatprep.mubr.msk.f32.mxu1 %vm26_vm0, %v16_v2 }
   0x5   :  { %146 = vmatmul.mubr.msk.f32.vlgmr.msra.gmra.mrb[0].mxu0 %vm26_vm0, %v15_v3  ;;  %149 = vmatmul.mubr.msk.f32.vlgmr.msra.gmra.mrb[0].mxu1 %vm26_vm0, %v17_v4 }
  0xd8   :  { %v147_v6 = vpop.f32.mrb[0].mxu0  ;;  %v150_v7 = vpop.f32.mrb[0].mxu1 }
  0xd9   :  { %v111_v8 = vadd.f32 %v147_v6, %v133_v5  ;;  %v121_v9 = vadd.f32 %v150_v7, %v133_v5  ;;  %v105_v10 = vpop.f32.mrb[1].mxu0  ;;  %v115_v11 = vpop.f32.mrb[1].mxu1 }
  0xda   :  { %v106_v12 = vadd.f32 %v133_v5, %v105_v10  ;;  %v116_v13 = vadd.f32 %v133_v5, %v115_v11 }
  0xdb   :  { %126 = vst.msk [vmem:[%s206_s3 + $0x8] sm:$0xff] %vm124_vm1, %v111_v8  ;;  %128 = vst.msk [vmem:[%s206_s3 + $0x18] sm:$0xff] %vm124_vm1, %v121_v9 }
  0xdc   :  { %125 = vst.msk [vmem:[%s206_s3] sm:$0xff] %vm124_vm1, %v106_v12  ;;  %127 = vst.msk [vmem:[%s206_s3 + $0x10] sm:$0xff] %vm124_vm1, %v116_v13 }

</bundles_post_ra>
